<compile_context>
chip_gen: v6e
topology: v6e:2x2x1
jax: 0.10.0
libtpu: 0.0.40
codegen_flags: <defaults>
</compile_context>

<pallas_src>
import functools

import jax
import jax.numpy as jnp
from jax.experimental import pallas as pl
from jax.experimental.pallas import tpu as pltpu


def _round_up(x, m):
    return ((x + m - 1) // m) * m


# ----------------------------------------------------------------------------
# Kernel
# ----------------------------------------------------------------------------
def deep_mtlr_kernel(x_ref, w1_ref, b1_ref, wc_ref, bc_ref, o_ref):
    # Hidden layer: Linear (bf16 MXU, f32 accumulate) + bias + ReLU (f32 VPU).
    h = jnp.dot(x_ref[...].astype(w1_ref.dtype), w1_ref[...],
                preferred_element_type=jnp.float32)
    h = jnp.maximum(h + b1_ref[...], 0.0)
    # MTLR + folded triangular projection: one matmul with pre-folded weights.
    z = jnp.dot(h.astype(wc_ref.dtype), wc_ref[...],
                preferred_element_type=jnp.float32)
    nb_out = o_ref.shape[-1]                     # static slice to the narrow output
    o_ref[...] = (z[:, :nb_out] + bc_ref[...]).astype(o_ref.dtype)


# ----------------------------------------------------------------------------
# One-time parameter prep (hoisted out of the per-call forward)
# ----------------------------------------------------------------------------
def prepare_params(w1, b1, wm, bm, g, compute_dtype=jnp.bfloat16):
    """Fold G into the MTLR weights (in f32), lane-pad, cast matmul operands to bf16."""
    F, H = w1.shape
    nb_out = g.shape[1]                          # num_time_bins + 1

    wc = jnp.dot(wm, g)                          # (H, nb_out)  f32 fold
    bc = jnp.dot(bm, g)                          # (1, nb_out)  f32 fold

    H_pad = _round_up(H, 128)
    OUT_pad = _round_up(nb_out, 128)

    # Zero padding is exact: ReLU(x@0 + 0) = 0 and zero rows of Wc contribute 0.
    w1_p = jnp.zeros((F, H_pad), jnp.float32).at[:, :H].set(w1).astype(compute_dtype)
    b1_p = jnp.zeros((1, H_pad), jnp.float32).at[:, :H].set(b1)           # f32 bias
    wc_p = (jnp.zeros((H_pad, OUT_pad), jnp.float32)
            .at[:H, :nb_out].set(wc).astype(compute_dtype))
    bc_p = bc.astype(jnp.float32)                # (1, nb_out) -- kept narrow
    return w1_p, b1_p, wc_p, bc_p


# ----------------------------------------------------------------------------
# Block-size selection under a VMEM budget
# ----------------------------------------------------------------------------
def _pick_block_m(N, F, H_pad, OUT_pad, nb_out, x_itemsize,
                  budget_bytes, max_block_m=1024):
    out_lanes = _round_up(max(nb_out, 1), 128)   # f32 output block lane-pads in VMEM
    weights_bytes = 2 * ((F * H_pad + H_pad * OUT_pad) * 2 + (H_pad + nb_out) * 4)
    per_row = (2 * F * x_itemsize                # x tile, double-buffered
               + 2 * out_lanes * 4               # output tile, double-buffered
               + (H_pad + OUT_pad) * 4)          # f32 intermediates h, z
    avail = max(budget_bytes - weights_bytes, 16 * per_row)
    bm = max(16, (avail // per_row // 16) * 16)  # multiple of 16 (bf16 sublane pack)
    bm = min(bm, max_block_m)
    if N > 16:                                   # >=2 grid steps -> 2-TC sharding (v7x)
        bm = min(bm, _round_up(-(-N // 2), 16))
    bm = min(bm, _round_up(N, 16))
    return max(16, bm)


# ----------------------------------------------------------------------------
# Forward wrapper
# ----------------------------------------------------------------------------
def deep_mtlr_forward(x, w1_p, b1_p, wc_p, bc_p, *, block_m=None,
                      vmem_budget_bytes=40 * 1024 * 1024,
                      vmem_limit_bytes=48 * 1024 * 1024):
    N, F = x.shape
    H_pad = w1_p.shape[1]
    OUT_pad = wc_p.shape[1]
    nb_out = bc_p.shape[1]                       # num_time_bins + 1 (narrow output)
    x_itemsize = jnp.dtype(x.dtype).itemsize

    if block_m is None:
        bm = _pick_block_m(N, F, H_pad, OUT_pad, nb_out, x_itemsize,
                           vmem_budget_bytes)
    else:
        bm = max(16, (int(block_m) // 16) * 16)
        bm = min(bm, _round_up(N, 16))

    grid = (pl.cdiv(N, bm),)                     # partial final block; no x padding

    w_itemsize = jnp.dtype(w1_p.dtype).itemsize
    cost = pl.CostEstimate(
        flops=2 * N * (F * H_pad + H_pad * OUT_pad),
        transcendentals=0,
        bytes_accessed=(N * F * x_itemsize                       # x read
                        + N * nb_out * 4                         # out write
                        + (F * H_pad + H_pad * OUT_pad) * w_itemsize
                        + (H_pad + nb_out) * 4),                 # biases
    )

    return pl.pallas_call(
        deep_mtlr_kernel,
        out_shape=jax.ShapeDtypeStruct((N, nb_out), jnp.float32),
        grid_spec=pltpu.PrefetchScalarGridSpec(
            num_scalar_prefetch=0,
            grid=grid,
            in_specs=[
                pl.BlockSpec((bm, F), lambda i: (i, 0)),          # x tile (streamed)
                pl.BlockSpec((F, H_pad), lambda i: (0, 0)),       # W1 (resident)
                pl.BlockSpec((1, H_pad), lambda i: (0, 0)),       # b1 (resident)
                pl.BlockSpec((H_pad, OUT_pad), lambda i: (0, 0)),  # folded Wc (resident)
                pl.BlockSpec((1, nb_out), lambda i: (0, 0)),      # folded bc (resident)
            ],
            out_specs=pl.BlockSpec((bm, nb_out), lambda i: (i, 0)),
        ),
        compiler_params=pltpu.CompilerParams(
            dimension_semantics=("parallel",),
            vmem_limit_bytes=vmem_limit_bytes,
        ),
        cost_estimate=cost,
    )(x, w1_p, b1_p, wc_p, bc_p)


# ----------------------------------------------------------------------------
# Parameter init (mirrors the PyTorch module) and references
# ----------------------------------------------------------------------------
def init_params(key, in_features, hidden, num_time_bins):
    k1, k2, k3 = jax.random.split(key, 3)
    bound1 = 1.0 / jnp.sqrt(in_features)         # PyTorch Linear default init scale
    w1 = jax.random.uniform(k1, (in_features, hidden), jnp.float32, -bound1, bound1)
    b1 = jax.random.uniform(k2, (1, hidden), jnp.float32, -bound1, bound1)
    std = jnp.sqrt(2.0 / (hidden + num_time_bins))   # xavier_normal_
    wm = std * jax.random.normal(k3, (hidden, num_time_bins), jnp.float32)
    bm = jnp.zeros((1, num_time_bins), jnp.float32)  # constant_(0.0)
    g = jnp.tril(jnp.ones((num_time_bins, num_time_bins + 1), jnp.float32))
    return w1, b1, wm, bm, g


def reference_forward_f32(x, w1, b1, wm, bm, g):
    h = jnp.maximum(jnp.dot(x, w1) + b1, 0.0)
    z = jnp.dot(h, wm) + bm
    return jnp.dot(z, g)


def reference_forward_matched(x, w1, b1, wm, bm, g, compute_dtype=jnp.bfloat16):
    # Matches the kernel's dtype choices (f32 G-fold, bf16 matmul operands,
    # f32 accumulation / bias / ReLU).
    wc = jnp.dot(wm, g)
    bc = jnp.dot(bm, g)
    h = jnp.dot(x.astype(compute_dtype), w1.astype(compute_dtype),
                preferred_element_type=jnp.float32) + b1
    h = jnp.maximum(h, 0.0)
    return jnp.dot(h.astype(compute_dtype), wc.astype(compute_dtype),
                   preferred_element_type=jnp.float32) + bc


if __name__ == "__main__":
    # Small shapes consistent with DeepMTLR(in_features=32, num_time_bins=8,
    # hidden_size=[64]).
    N, F, H, NB = 16, 32, 64, 8

    key = jax.random.PRNGKey(0)
    kx, kp = jax.random.split(key)
    x = jax.random.normal(kx, (N, F), jnp.float32)
    w1, b1, wm, bm, g = init_params(kp, F, H, NB)

    # One-time weight prep (hoisted out of the per-call forward).
    params = prepare_params(w1, b1, wm, bm, g)
    params = tuple(jax.block_until_ready(p) for p in params)

    fwd = jax.jit(functools.partial(deep_mtlr_forward))
    out = jax.block_until_ready(fwd(x, *params))

    assert out.shape == (N, NB + 1), out.shape

    # Tight check against a dtype-matched reference (kernel structure is exact).
    ref_matched = reference_forward_matched(x, w1, b1, wm, bm, g)
    assert jnp.allclose(out, ref_matched, atol=1e-2, rtol=1e-2), \
        "mismatch vs bf16-matched reference"

    # Looser check against the pure-f32 PyTorch-equivalent reference
    # (bf16 matmul operands => bf16-level tolerance).
    ref_f32 = reference_forward_f32(x, w1, b1, wm, bm, g)
    assert jnp.allclose(out, ref_f32, atol=5e-2, rtol=5e-2), \
        "mismatch vs pure-f32 reference beyond bf16 tolerance"

    print("KERNEL_OK")
</pallas_src>

<mosaic_0001>
module attributes {stable_mosaic.version = 11 : i64} {
  func.func @deep_mtlr_kernel(%arg0: i32, %arg1: memref<16x32xf32, #tpu.memory_space<vmem>>, %arg2: memref<32x128xbf16, #tpu.memory_space<vmem>>, %arg3: memref<1x128xf32, #tpu.memory_space<vmem>>, %arg4: memref<128x128xbf16, #tpu.memory_space<vmem>>, %arg5: memref<1x9xf32, #tpu.memory_space<vmem>>, %arg6: memref<16x9xf32, #tpu.memory_space<vmem>>) attributes {dimension_semantics = [#tpu.dimension_semantics<parallel>], iteration_bounds = array<i64: 1>, scalar_prefetch = 0 : i64, scratch_operands = 0 : i64, tpu.core_type = #tpu.core_type<tc>, window_params = [{transform_indices = @transform_0, window_bounds = array<i64: 16, 32>}, {pipeline_mode = #tpu.pipeline_mode<synchronous>, transform_indices = @transform_1, window_bounds = array<i64: 32, 128>}, {pipeline_mode = #tpu.pipeline_mode<synchronous>, transform_indices = @transform_2, window_bounds = array<i64: 1, 128>}, {pipeline_mode = #tpu.pipeline_mode<synchronous>, transform_indices = @transform_3, window_bounds = array<i64: 128, 128>}, {pipeline_mode = #tpu.pipeline_mode<synchronous>, transform_indices = @transform_4, window_bounds = array<i64: 1, 9>}, {transform_indices = @transform_5, window_bounds = array<i64: 16, 9>}]} {
    %c0 = arith.constant 0 : index
    %c0_0 = arith.constant 0 : index
    %0 = vector.load %arg1[%c0, %c0_0] : memref<16x32xf32, #tpu.memory_space<vmem>>, vector<16x32xf32>
    %1 = arith.truncf %0 : vector<16x32xf32> to vector<16x32xbf16>
    %c0_1 = arith.constant 0 : index
    %c0_2 = arith.constant 0 : index
    %2 = vector.load %arg2[%c0_1, %c0_2] : memref<32x128xbf16, #tpu.memory_space<vmem>>, vector<32x128xbf16>
    %cst = arith.constant dense<0.000000e+00> : vector<16x128xf32>
    %3 = tpu.matmul %1, %2, %cst {dimension_numbers = #tpu.dot_dimension_numbers<[1], [0], [0], [1], [0, 0, 1, 1], [], []>} : vector<16x32xbf16>, vector<32x128xbf16>, vector<16x128xf32> -> vector<16x128xf32>
    %c0_3 = arith.constant 0 : index
    %c0_4 = arith.constant 0 : index
    %4 = vector.load %arg3[%c0_3, %c0_4] : memref<1x128xf32, #tpu.memory_space<vmem>>, vector<1x128xf32>
    %5 = vector.broadcast %4 : vector<1x128xf32> to vector<16x128xf32>
    %6 = arith.addf %3, %5 : vector<16x128xf32>
    %cst_5 = arith.constant 0.000000e+00 : f32
    %7 = vector.broadcast %cst_5 : f32 to vector<16x128xf32>
    %8 = arith.maximumf %6, %7 : vector<16x128xf32>
    %9 = arith.truncf %8 : vector<16x128xf32> to vector<16x128xbf16>
    %c0_6 = arith.constant 0 : index
    %c0_7 = arith.constant 0 : index
    %10 = vector.load %arg4[%c0_6, %c0_7] : memref<128x128xbf16, #tpu.memory_space<vmem>>, vector<128x128xbf16>
    %cst_8 = arith.constant dense<0.000000e+00> : vector<16x128xf32>
    %11 = tpu.matmul %9, %10, %cst_8 {dimension_numbers = #tpu.dot_dimension_numbers<[1], [0], [0], [1], [0, 0, 1, 1], [], []>} : vector<16x128xbf16>, vector<128x128xbf16>, vector<16x128xf32> -> vector<16x128xf32>
    %12 = vector.extract_strided_slice %11 {offsets = [0, 0], sizes = [16, 9], strides = [1, 1]} : vector<16x128xf32> to vector<16x9xf32>
    %c0_9 = arith.constant 0 : index
    %c0_10 = arith.constant 0 : index
    %13 = vector.load %arg5[%c0_9, %c0_10] : memref<1x9xf32, #tpu.memory_space<vmem>>, vector<1x9xf32>
    %14 = vector.broadcast %13 : vector<1x9xf32> to vector<16x9xf32>
    %15 = arith.addf %12, %14 : vector<16x9xf32>
    %c0_11 = arith.constant 0 : index
    %c0_12 = arith.constant 0 : index
    %16 = vector.load %arg6[%c0_11, %c0_12] : memref<16x9xf32, #tpu.memory_space<vmem>>, vector<16x9xf32>
    tpu.vector_store %arg6[%c0_11, %c0_12], %15 {strides = array<i32>} : memref<16x9xf32, #tpu.memory_space<vmem>>, vector<16x9xf32>,
    return
  }
  func.func @transform_0(%arg0: i32) -> (i32, i32) {
    %c0_i32 = arith.constant 0 : i32
    %c0_i32_0 = arith.constant 0 : i32
    return %arg0, %c0_i32 : i32, i32
  }
  func.func @transform_1(%arg0: i32) -> (i32, i32) {
    %c0_i32 = arith.constant 0 : i32
    %c0_i32_0 = arith.constant 0 : i32
    %c0_i32_1 = arith.constant 0 : i32
    return %c0_i32, %c0_i32_0 : i32, i32
  }
  func.func @transform_2(%arg0: i32) -> (i32, i32) {
    %c0_i32 = arith.constant 0 : i32
    %c0_i32_0 = arith.constant 0 : i32
    %c0_i32_1 = arith.constant 0 : i32
    return %c0_i32, %c0_i32_0 : i32, i32
  }
  func.func @transform_3(%arg0: i32) -> (i32, i32) {
    %c0_i32 = arith.constant 0 : i32
    %c0_i32_0 = arith.constant 0 : i32
    %c0_i32_1 = arith.constant 0 : i32
    return %c0_i32, %c0_i32_0 : i32, i32
  }
  func.func @transform_4(%arg0: i32) -> (i32, i32) {
    %c0_i32 = arith.constant 0 : i32
    %c0_i32_0 = arith.constant 0 : i32
    %c0_i32_1 = arith.constant 0 : i32
    return %c0_i32, %c0_i32_0 : i32, i32
  }
  func.func @transform_5(%arg0: i32) -> (i32, i32) {
    %c0_i32 = arith.constant 0 : i32
    %c0_i32_0 = arith.constant 0 : i32
    return %arg0, %c0_i32 : i32, i32
  }
}

</mosaic_0001>

<bundles_post_ra>
// kernel: deep_mtlr_forward.1
= control target key start
LH: loop header
LB: loop body
LE: loop exit
PB: predicated region body
PF: predicated region fallthrough
CT: control target
= control target key end

     0   :  { %10 = vsyncpa [#allocation3], 0  ;;  %s495_s0 = inlined_call_operand.hbm [shape: f32[16,32], index: 0, kind: input, shape index: {}]   ;;  %s496_s1 = inlined_call_operand.hbm [shape: bf16[32,128], index: 1, kind: input, shape index: {}]   ;;  %s497_s2 = inlined_call_operand.vmem [shape: f32[1,128], index: 2, kind: input, shape index: {}]   ;;  %s498_s3 = inlined_call_operand.hbm [shape: bf16[128,128], index: 3, kind: input, shape index: {}]   ;;  %s499_s4 = inlined_call_operand.vmem [shape: f32[1,9], index: 4, kind: input, shape index: {}]   ;;  %s500_s5 = inlined_call_operand.hbm [shape: f32[16,9], index: 5, kind: output, shape index: {}]  }
   0x1   :  { %11 = vsyncpa [#allocation6], 0 }
   0x2   :  { %12 = vsyncpa [#allocation4], 0  ;;  %s431_s18 = smov [#allocation5]  }
   0x3   :  { %s30_s19 = sshll.u32 %s431_s18, 4  ;;  %s31_s19 = int_to_ptr.vmem [resolvable:$true] %s30_s19 }
   0x4   :  { %s353_s20 = scalar_lea.vmem %s31_s19, 256  ;;  %p358_p1 = scmp.lt.s32.totalorder %s31_s19, %s31_s19 }
   0x5   :  { %p354_p0 = scmp.ne.s32.totalorder %s31_s19, %s353_s20  ;;  %p359_p2 = scmp.lt.s32.totalorder %s353_s20, %s353_s20 }
   0x7   :  { %p360_p3 = por %p359_p2, %p358_p1 }
   0x9   :  { %p361_p4 = pnand %p360_p3, %p354_p0 }
   0xb   :  { %364 = shalt.err (!%p361_p4)
}
   0xc   :  { %s432_s21 = smov 64   ;;  %s433_s22 = smov 4  }
   0xd   :  { %36 = dma.hbm_to_vmem [thread:$0]  %s496_s1, 256, %s31_s19, [#allocation6], %s432_s21, %s432_s21, %s433_s22  }
   0xe   :  { %s434_s25 = smov [#allocation2]  }
   0xf   :  { %s18_s26 = sshll.u32 %s434_s25, 4  ;;  %s19_s26 = int_to_ptr.vmem [resolvable:$true] %s18_s26 }
  0x10   :  { %s373_s27 = scalar_lea.vmem %s19_s26, 256  ;;  %p378_p6 = scmp.lt.s32.totalorder %s19_s26, %s19_s26 }
  0x11   :  { %p374_p5 = scmp.ne.s32.totalorder %s19_s26, %s373_s27  ;;  %p379_p7 = scmp.lt.s32.totalorder %s373_s27, %s373_s27 }
  0x13   :  { %p380_p8 = por %p379_p7, %p378_p6 }
  0x15   :  { %p381_p9 = pnand %p380_p8, %p374_p5 }
  0x17   :  { %384 = shalt.err (!%p381_p9)
}
  0x18   :  { %s435_s28 = smov 128   ;;  %s436_s29 = smov 8  }
  0x19   :  { %24 = dma.hbm_to_vmem [thread:$0]  %s495_s0, 256, %s19_s26, [#allocation3], %s435_s28, %s435_s28, %s436_s29  }
  0x1a   :  { %s437_s1 = smov [#allocation7]  }
  0x1b   :  { %s44_s7 = sshll.u32 %s437_s1, 4  ;;  %s45_s7 = int_to_ptr.vmem [resolvable:$true] %s44_s7 }
  0x1c   :  { %s393_s8 = scalar_lea.vmem %s45_s7, 1024  ;;  %p398_p11 = scmp.lt.s32.totalorder %s45_s7, %s45_s7 }
  0x1d   :  { %p394_p10 = scmp.ne.s32.totalorder %s45_s7, %s393_s8  ;;  %p399_p12 = scmp.lt.s32.totalorder %s393_s8, %s393_s8 }
  0x1f   :  { %p400_p13 = por %p399_p12, %p398_p11 }
  0x21   :  { %p401_p0 = pnand %p400_p13, %p394_p10 }
  0x23   :  { %404 = shalt.err (!%p401_p0)
}
  0x24   :  { %50 = dma.hbm_to_vmem [thread:$0]  %s498_s3, 1024, %s45_s7, [#allocation6], %s432_s21, %s432_s21, %s433_s22  }
  0x25   :  { %425 = dma.done.wait [#allocation3], 256  }
  0x26   :  { %426 = vsyncadd [#allocation3], 4294967040 }
  0x27   :  { %427 = dma.done.wait [#allocation6], 1280  }
  0x28   :  { %428 = vsyncadd [#allocation6], 4294966016  ;;  %v438_v0 = vmov 0.0   ;;  %vm439_vm0 = vmmov 0   ;;  %v335_v1 = vld [vmem:[#allocation5 + $0x8] sm:$0xff]   ;;  %v336_v2 = vld [vmem:[#allocation5] sm:$0xff]  }
  0x29   :  { %297 = vmatprep.subr.bf16.mxu0 %v438_v0  ;;  %301 = vmatprep.mubr.msk.bf16.mxu0 %vm439_vm0, %v438_v0  ;;  %v63_v3 = vld [vmem:[#allocation2] sm:$0xff]  ;;  %v64_v4 = vld [vmem:[#allocation2 + $0x8] sm:$0xff]  ;;  %v337_v5 = vld [vmem:[#allocation7 + $0x38] sm:$0xff]   ;;  %vm89_vm1 = vcmask 261120   ;;  %vm251_vm2 = vcmask 72704   ;;  %s440_s13 = smov [#allocation8]  }
  0x2a   :  { %305 = vmatprep.subr.bf16.mxu1 %v438_v0  ;;  %321 = vmatprep.mubr.msk.bf16.mxu1 %vm439_vm0, %v438_v0  ;;  %v65_v6 = vpack.c.bf16 %v64_v4, %v63_v3  ;;  %v338_v7 = vld [vmem:[#allocation7 + $0x30] sm:$0xff]   ;;  %v339_v8 = vld [vmem:[#allocation7 + $0x28] sm:$0xff]   ;;  %v340_v9 = vld [vmem:[#allocation7 + $0x20] sm:$0xff]  }
  0x2b   :  { %298 = vmatpush3.bf16.msra.mxu0 %v335_v1  ;;  %306 = vmatpush3.bf16.msra.mxu1 %v337_v5  ;;  %v341_v10 = vld [vmem:[#allocation7 + $0x18] sm:$0xff]   ;;  %v342_v11 = vld [vmem:[#allocation7 + $0x10] sm:$0xff]   ;;  %v343_v12 = vld [vmem:[#allocation7 + $0x8] sm:$0xff]  }
  0x2c   :  { %299 = vmatprep.subr.bf16.mxu0 %v438_v0  ;;  %307 = vmatprep.subr.bf16.mxu1 %v438_v0  ;;  %v344_v13 = vld [vmem:[#allocation7] sm:$0xff]  }
  0x2d   :  { %v272_v14 = vld [vmem:[%s497_s2] ss:$0 sm:$0xff]  ;;  %s259_s2 = sshll.u32 %s440_s13, 4  ;;  %s260_s2 = int_to_ptr.vmem [resolvable:$true] %s259_s2 }
  0x2e   :  { %v284_v24 = vld [vmem:[%s499_s4] ss:$0 sm:$0xff]  ;;  %s405_s14 = scalar_lea.vmem %s260_s2, 256  ;;  %p410_p2 = scmp.lt.s32.totalorder %s260_s2, %s260_s2 }
  0x2f   :  { %300 = vmatpush3.bf16.msra.mxu0 %v336_v2  ;;  %308 = vmatpush3.bf16.msra.mxu1 %v338_v7  ;;  %p406_p1 = scmp.ne.s32.totalorder %s260_s2, %s405_s14  ;;  %p411_p3 = scmp.lt.s32.totalorder %s405_s14, %s405_s14 }
  0x30   :  { %309 = vmatprep.subr.bf16.mxu1 %v438_v0 }
  0x31   :  { %p412_p4 = por %p411_p3, %p410_p2 }
  0x32   :  { %302 = vmatmul.mubr.msk.bf16.vlgmr.msra.gmra.mxu0 %vm89_vm1, %v65_v6 }
  0x33   :  { %310 = vmatpush3.bf16.msra.mxu1 %v339_v8  ;;  %p413_p5 = pnand %p412_p4, %p406_p1 }
  0x34   :  { %311 = vmatprep.subr.bf16.mxu1 %v438_v0 }
  0x37   :  { %312 = vmatpush3.bf16.msra.mxu1 %v340_v9 }
  0x38   :  { %313 = vmatprep.subr.bf16.mxu1 %v438_v0 }
  0x3b   :  { %314 = vmatpush3.bf16.msra.mxu1 %v341_v10 }
  0x3c   :  { %315 = vmatprep.subr.bf16.mxu1 %v438_v0 }
  0x3f   :  { %316 = vmatpush3.bf16.msra.mxu1 %v342_v11 }
  0x40   :  { %317 = vmatprep.subr.bf16.mxu1 %v438_v0 }
  0x43   :  { %318 = vmatpush3.bf16.msra.mxu1 %v343_v12 }
  0x44   :  { %319 = vmatprep.subr.bf16.mxu1 %v438_v0 }
  0x47   :  { %320 = vmatpush3.bf16.msra.mxu1 %v344_v13 }
  0xf2   :  { %v127_v15 = vpop.f32.mrf.mxu0 }
  0xf3   :  { %v128_v17 = vadd.f32 %v272_v14, %v127_v15 }
  0xf4   :  { %v303_v16 = vpop.f32.mrf.mxu0 }
  0xf5   :  { %v134_v21 = vmax.f32 %v128_v17, 0.0 }
  0xf6   :  { %v130_v18 = vpop.f32.mrf.mxu0 }
  0xf7   :  { %v131_v19 = vadd.f32 %v272_v14, %v130_v18 }
  0xf8   :  { %v304_v20 = vpop.f32.mrf.mxu0 }
  0xf9   :  { %v135_v22 = vmax.f32 %v131_v19, 0.0 }
  0xfb   :  { %v136_v23 = vpack.c.bf16 %v135_v22, %v134_v21 }
  0xfd   :  { %322 = vmatmul.mubr.bf16.vlgmr.msra.gmra.mxu1 %v136_v23 }
 0x1bd   :  { %v235_v25 = vpop.f32.mrf.mxu1 }
 0x1be   :  { %v249_v26 = vadd.f32 %v284_v24, %v235_v25 }
 0x1bf   :  { %v323_v27 = vpop.f32.mrf.mxu1 }
 0x1c0   :  { %252 = vst.msk [vmem:[#allocation8] sm:$0xff] %vm251_vm2, %v249_v26 }
 0x1c1   :  { %v238_v28 = vpop.f32.mrf.mxu1 }
 0x1c2   :  { %v250_v29 = vadd.f32 %v284_v24, %v238_v28 }
 0x1c3   :  { %v324_v30 = vpop.f32.mrf.mxu1 }
 0x1c4   :  { %253 = vst.msk [vmem:[#allocation8 + $0x8] sm:$0xff] %vm251_vm2, %v250_v29 }
 0x1c5   :  { %416 = shalt.err (!%p413_p5)
}
 0x1c6   :  { %265 = dma.vmem_to_hbm [thread:$0]  %s260_s2, 256, %s500_s5, [#allocation4], %s435_s28, %s435_s28, %s436_s29  }
 0x1c7   :  { %429 = dma.done.wait [#allocation4], 256  }
 0x1c8   :  { %430 = vsyncadd [#allocation4], 4294967040 }
 0x1c9   :  { %269 = vsyncpa [#allocation3], 1 }
 0x1ca   :  { %270 = vsyncpa [#allocation6], 1 }
 0x1cb   :  { %271 = vsyncpa [#allocation4], 1 }

</bundles_post_ra>
